<compile_context>
chip_gen: v7x
topology: tpu7x:2x2x1
jax: 0.10.0
libtpu: 0.0.40
codegen_flags: <defaults>
</compile_context>

<pallas_src>
import functools

import jax
import jax.numpy as jnp
import numpy as np
from jax import lax
from jax.experimental import pallas as pl
from jax.experimental.pallas import tpu as pltpu


def _round_up(a, m):
    return (a + m - 1) // m * m


def _stft_mag_kernel(frames_ref, basis_ref, out_ref):
    # frames_ref: (TF, n_fft)        windowless frames for this tile
    # basis_ref : (2*F_pad, n_fft)   [window-folded cos ; window-folded -sin], zero-padded
    # out_ref   : (F_pad, TF)        magnitudes, frames on the lane axis
    prod = lax.dot_general(
        basis_ref[...], frames_ref[...],
        dimension_numbers=(((1,), (1,)), ((), ())),       # basis @ frames^T
        preferred_element_type=jnp.float32,
    )                                                     # (2*F_pad, TF)
    f_pad = out_ref.shape[0]
    re = prod[:f_pad, :]
    im = prod[f_pad:, :]
    out_ref[...] = jnp.sqrt(re * re + im * im).astype(out_ref.dtype)


def magnitude_stft(x, n_fft, hop_length, *, tile_frames=256):
    """x: (B, T) float32 -> (B, n_fft//2 + 1, n_frames) float32."""
    x = x.astype(jnp.float32)
    B, T = x.shape
    pad = n_fft // 2
    n_freq = n_fft // 2 + 1
    f_pad = _round_up(n_freq, 128)                        # lane-dense freq axis

    # --- glue (XLA): reflect-pad + frame extraction ---
    xp = jnp.pad(x, ((0, 0), (pad, pad)), mode="reflect")           # (B, T + 2*pad)
    n_frames = 1 + (T + 2 * pad - n_fft) // hop_length

    tile_frames = max(128, _round_up(int(tile_frames), 128))
    tf = min(tile_frames, _round_up(n_frames, 128))
    n_frames_pad = _round_up(n_frames, tf)

    starts = jnp.arange(n_frames) * hop_length
    idx = starts[:, None] + jnp.arange(n_fft)[None, :]              # (n_frames, n_fft)
    frames = xp[:, idx]                                             # (B, n_frames, n_fft)
    if n_frames_pad != n_frames:
        frames = jnp.pad(frames, ((0, 0), (0, n_frames_pad - n_frames), (0, 0)))

    # --- constants: periodic Hann folded into the fused real-DFT basis ---
    n = np.arange(n_fft, dtype=np.float64)
    win = 0.5 - 0.5 * np.cos(2.0 * np.pi * n / n_fft)               # periodic Hann
    k = np.arange(n_freq, dtype=np.float64)
    ang = 2.0 * np.pi * np.outer(k, n) / n_fft                      # (n_freq, n_fft)
    basis_t = np.zeros((2 * f_pad, n_fft), dtype=np.float32)
    basis_t[:n_freq] = (np.cos(ang) * win).astype(np.float32)       # real part rows
    basis_t[f_pad:f_pad + n_freq] = (-np.sin(ang) * win).astype(np.float32)  # imag rows
    basis_j = jnp.asarray(basis_t)

    grid = (B, n_frames_pad // tf)

    # Rough VMEM budget (basis + double-buffered frames/out blocks) + margin.
    est_vmem = (2 * f_pad * n_fft * 4
                + 2 * (tf * n_fft * 4)
                + 2 * (f_pad * tf * 4)
                + (2 << 20))

    out = pl.pallas_call(
        _stft_mag_kernel,
        out_shape=jax.ShapeDtypeStruct((B, f_pad, n_frames_pad), jnp.float32),
        grid_spec=pltpu.PrefetchScalarGridSpec(
            num_scalar_prefetch=0,
            grid=grid,
            in_specs=[
                # frames: one (tf, n_fft) tile per grid step (batch dim squeezed)
                pl.BlockSpec((None, tf, n_fft), lambda b, j: (b, j, 0)),
                # fused window-folded basis: constant block, loaded once
                pl.BlockSpec((2 * f_pad, n_fft), lambda b, j: (0, 0)),
            ],
            out_specs=pl.BlockSpec((None, f_pad, tf), lambda b, j: (b, 0, j)),
        ),
        compiler_params=pltpu.CompilerParams(
            dimension_semantics=("parallel", "parallel"),
            vmem_limit_bytes=int(max(32 << 20, est_vmem)),
        ),
    )(frames, basis_j)

    # Drop the freq / frame padding; layout is already (B, freq, frames).
    return out[:, :n_freq, :n_frames]


def _reference_magnitude_stft(x, n_fft, hop_length):
    """Independent float64 numpy reference (np.fft.rfft) with torch.stft semantics."""
    x = np.asarray(x, dtype=np.float64)
    B, T = x.shape
    pad = n_fft // 2
    n_freq = n_fft // 2 + 1
    xp = np.pad(x, ((0, 0), (pad, pad)), mode="reflect")
    n_frames = 1 + (T + 2 * pad - n_fft) // hop_length
    n = np.arange(n_fft, dtype=np.float64)
    win = 0.5 - 0.5 * np.cos(2.0 * np.pi * n / n_fft)
    out = np.zeros((B, n_freq, n_frames), dtype=np.float64)
    for b in range(B):
        for t in range(n_frames):
            fr = xp[b, t * hop_length:t * hop_length + n_fft] * win
            out[b, :, t] = np.abs(np.fft.rfft(fr))
    return out.astype(np.float32)


if __name__ == "__main__":
    n_fft = 128
    hop_length = 32
    B, T = 2, 256

    key = jax.random.PRNGKey(0)
    x = jax.random.normal(key, (B, T), dtype=jnp.float32)

    fn = jax.jit(functools.partial(magnitude_stft, n_fft=n_fft, hop_length=hop_length))
    out = fn(x)
    out = jax.block_until_ready(out)

    ref = _reference_magnitude_stft(np.asarray(x), n_fft, hop_length)
    assert out.shape == (B, n_fft // 2 + 1, 1 + T // hop_length), out.shape
    np.testing.assert_allclose(np.asarray(out), ref, rtol=1e-3, atol=1e-3)

    print("KERNEL_OK")
</pallas_src>

<mosaic_0001>
module attributes {stable_mosaic.version = 11 : i64} {
  func.func @_stft_mag_kernel(%arg0: i32, %arg1: i32, %arg2: memref<1x128x128xf32, #tpu.memory_space<vmem>>, %arg3: memref<256x128xf32, #tpu.memory_space<vmem>>, %arg4: memref<1x128x128xf32, #tpu.memory_space<vmem>>) attributes {dimension_semantics = [#tpu.dimension_semantics<parallel>, #tpu.dimension_semantics<parallel>], iteration_bounds = array<i64: 2, 1>, scalar_prefetch = 0 : i64, scratch_operands = 0 : i64, tpu.core_type = #tpu.core_type<tc>, window_params = [{transform_indices = @transform_0, window_bounds = array<i64: 1, 128, 128>}, {pipeline_mode = #tpu.pipeline_mode<synchronous>, transform_indices = @transform_1, window_bounds = array<i64: 256, 128>}, {transform_indices = @transform_2, window_bounds = array<i64: 1, 128, 128>}]} {
    %c0 = arith.constant 0 : index
    %c0_0 = arith.constant 0 : index
    %0 = vector.load %arg3[%c0, %c0_0] : memref<256x128xf32, #tpu.memory_space<vmem>>, vector<256x128xf32>
    %c0_1 = arith.constant 0 : index
    %c0_2 = arith.constant 0 : index
    %c0_3 = arith.constant 0 : index
    %1 = vector.load %arg2[%c0_1, %c0_2, %c0_3] : memref<1x128x128xf32, #tpu.memory_space<vmem>>, vector<1x128x128xf32>
    %2 = vector.shape_cast %1 : vector<1x128x128xf32> to vector<128x128xf32>
    %cst = arith.constant dense<0.000000e+00> : vector<256x128xf32>
    %3 = tpu.matmul %0, %2, %cst {dimension_numbers = #tpu.dot_dimension_numbers<[1], [1], [0], [0], [0, 0, 1, 0], [], []>} : vector<256x128xf32>, vector<128x128xf32>, vector<256x128xf32> -> vector<256x128xf32>
    %4 = vector.extract_strided_slice %3 {offsets = [0, 0], sizes = [128, 128], strides = [1, 1]} : vector<256x128xf32> to vector<128x128xf32>
    %5 = vector.extract_strided_slice %3 {offsets = [128, 0], sizes = [128, 128], strides = [1, 1]} : vector<256x128xf32> to vector<128x128xf32>
    %6 = arith.mulf %4, %4 : vector<128x128xf32>
    %7 = arith.mulf %5, %5 : vector<128x128xf32>
    %8 = arith.addf %6, %7 : vector<128x128xf32>
    %9 = math.sqrt %8 : vector<128x128xf32>
    %c0_4 = arith.constant 0 : index
    %c0_5 = arith.constant 0 : index
    %c0_6 = arith.constant 0 : index
    %10 = vector.load %arg4[%c0_4, %c0_5, %c0_6] : memref<1x128x128xf32, #tpu.memory_space<vmem>>, vector<1x128x128xf32>
    %11 = vector.shape_cast %10 : vector<1x128x128xf32> to vector<128x128xf32>
    %12 = vector.shape_cast %9 : vector<128x128xf32> to vector<1x128x128xf32>
    tpu.vector_store %arg4[%c0_4, %c0_5, %c0_6], %12 {strides = array<i32>} : memref<1x128x128xf32, #tpu.memory_space<vmem>>, vector<1x128x128xf32>,
    return
  }
  func.func @transform_0(%arg0: i32, %arg1: i32) -> (i32, i32, i32) {
    %c0_i32 = arith.constant 0 : i32
    %c0_i32_0 = arith.constant 0 : i32
    return %arg0, %arg1, %c0_i32 : i32, i32, i32
  }
  func.func @transform_1(%arg0: i32, %arg1: i32) -> (i32, i32) {
    %c0_i32 = arith.constant 0 : i32
    %c0_i32_0 = arith.constant 0 : i32
    %c0_i32_1 = arith.constant 0 : i32
    return %c0_i32, %c0_i32_0 : i32, i32
  }
  func.func @transform_2(%arg0: i32, %arg1: i32) -> (i32, i32, i32) {
    %c0_i32 = arith.constant 0 : i32
    %c0_i32_0 = arith.constant 0 : i32
    return %arg0, %c0_i32, %arg1 : i32, i32, i32
  }
}

</mosaic_0001>

<bundles_post_ra>
// kernel: magnitude_stft.1
= control target key start
LH: loop header
LB: loop body
LE: loop exit
PB: predicated region body
PF: predicated region fallthrough
CT: control target
= control target key end

     0   :  { %s996_s9 = smov 0   ;;  %s998_s10 = smov 0   ;;  %s1280_s0 = inlined_call_operand.vmem [shape: f32[2,128,128], index: 0, kind: input, shape index: {}]   ;;  %s1281_s1 = inlined_call_operand.vmem [shape: f32[256,128], index: 1, kind: input, shape index: {}]   ;;  %s1282_s2 = inlined_call_operand.vmem [shape: f32[2,128,128], index: 2, kind: output, shape index: {}]  }
   0x1   :  { %s1000_s11 = smov 0  }
   0x2 LB: > { %s24_s12 = sadd.s32 1, %s975_s10  ;;  %p716_p0 = scmp.ge.s32.totalorder %s979_s11, 1  ;;  %s979_s11 = sphi %s1000_s11, %s12_s11   ;;  %s975_s10 = sphi %s998_s10, %s1284_s10   ;;  %s971_s9 = sphi %s996_s9, %s1283_s9  }
   0x3   : > { %p26_p1 = scmp.ge.s32.totalorder %s24_s12, 2  ;;  %p133_p2 = scmp.lt.s32.totalorder %s979_s11, 3 }
   0x5   : > { %s1286_s12 = smov (%p26_p1, %s24_s12), 0  ;;  %p134_p3 = pnand %p716_p0, %p133_p2 }
   0x6   : > { %p163_p4 = scmp.lt.s32.totalorder (!%p134_p3), %s971_s9, 1  ;;  %v180_v0 = vld [vmem:[%s1281_s1] sm:$0xff] (!%p134_p3)  ;;  %v181_v26 = vld [vmem:[%s1281_s1 + $0x8] sm:$0xff] (!%p134_p3)  ;;  %v182_v28 = vld [vmem:[%s1281_s1 + $0x10] sm:$0xff] (!%p134_p3) }
   0x7   : > { %137 = sbr.rel (%p134_p3) target bundleno = 348 (0x15c), region = 28  ;;  %v196_v1 = vld [vmem:[%s1281_s1 + $0x80] sm:$0xff] (!%p134_p3)  ;;  %805 = vmatprep.mubr.f32.mxu0 (!%p134_p3), %v180_v0  ;;  %v197_v27 = vld [vmem:[%s1281_s1 + $0x88] sm:$0xff] (!%p134_p3)  ;;  %v198_v29 = vld [vmem:[%s1281_s1 + $0x90] sm:$0xff] (!%p134_p3) }
   0x8   : > { %829 = vmatprep.mubr.f32.mxu1 (!%p134_p3), %v196_v1  ;;  %v183_v30 = vld [vmem:[%s1281_s1 + $0x18] sm:$0xff] (!%p134_p3)  ;;  %v184_v32 = vld [vmem:[%s1281_s1 + $0x20] sm:$0xff] (!%p134_p3)  ;;  %v185_v34 = vld [vmem:[%s1281_s1 + $0x28] sm:$0xff] (!%p134_p3) }
   0x9   : > { %v199_v31 = vld [vmem:[%s1281_s1 + $0x98] sm:$0xff] (!%p134_p3)  ;;  %v200_v33 = vld [vmem:[%s1281_s1 + $0xa0] sm:$0xff] (!%p134_p3)  ;;  %v201_v35 = vld [vmem:[%s1281_s1 + $0xa8] sm:$0xff] (!%p134_p3) }
   0xa   : > { %v186_v36 = vld [vmem:[%s1281_s1 + $0x30] sm:$0xff] (!%p134_p3)  ;;  %v187_v38 = vld [vmem:[%s1281_s1 + $0x38] sm:$0xff] (!%p134_p3)  ;;  %v188_v40 = vld [vmem:[%s1281_s1 + $0x40] sm:$0xff] (!%p134_p3) }
   0xb   : > { %v202_v37 = vld [vmem:[%s1281_s1 + $0xb0] sm:$0xff] (!%p134_p3)  ;;  %v203_v39 = vld [vmem:[%s1281_s1 + $0xb8] sm:$0xff] (!%p134_p3)  ;;  %v204_v41 = vld [vmem:[%s1281_s1 + $0xc0] sm:$0xff] (!%p134_p3) }
   0xc   : > { %v189_v42 = vld [vmem:[%s1281_s1 + $0x48] sm:$0xff] (!%p134_p3)  ;;  %v190_v44 = vld [vmem:[%s1281_s1 + $0x50] sm:$0xff] (!%p134_p3)  ;;  %v191_v46 = vld [vmem:[%s1281_s1 + $0x58] sm:$0xff] (!%p134_p3) }
   0xd   : > { %v205_v43 = vld [vmem:[%s1281_s1 + $0xc8] sm:$0xff] (!%p134_p3)  ;;  %v206_v45 = vld [vmem:[%s1281_s1 + $0xd0] sm:$0xff] (!%p134_p3)  ;;  %v207_v47 = vld [vmem:[%s1281_s1 + $0xd8] sm:$0xff] (!%p134_p3) }
   0xe   : > { %s1288_s9 = smov (!%p163_p4, %s971_s9), 1  ;;  %v192_v48 = vld [vmem:[%s1281_s1 + $0x60] sm:$0xff]  ;;  %v193_v50 = vld [vmem:[%s1281_s1 + $0x68] sm:$0xff]  ;;  %v194_v52 = vld [vmem:[%s1281_s1 + $0x70] sm:$0xff] }
   0xf   : > { %s723_s17 = sshll.u32 %s1288_s9, 7  ;;  %v208_v49 = vld [vmem:[%s1281_s1 + $0xe0] sm:$0xff]  ;;  %v209_v51 = vld [vmem:[%s1281_s1 + $0xe8] sm:$0xff]  ;;  %v210_v53 = vld [vmem:[%s1281_s1 + $0xf0] sm:$0xff] }
  0x10   : > { %s1028_s20 = scalar_lea.vmem %s1280_s0, %s723_s17  ;;  %v195_v54 = vld [vmem:[%s1281_s1 + $0x78] sm:$0xff]  ;;  %s1158_s13 = scalar_lea.vmem %s1282_s2, %s723_s17 }
  0x11   : > { %v212_v2 = vld [vmem:[%s1028_s20] sm:$0xff]  ;;  %v213_v3 = vld [vmem:[%s1028_s20 + $0x8] sm:$0xff]  ;;  %v214_v4 = vld [vmem:[%s1028_s20 + $0x10] sm:$0xff] }
  0x12   : > { %v853_v5 = vpack.c.bf16 %v213_v3, %v212_v2  ;;  %v215_v6 = vld [vmem:[%s1028_s20 + $0x18] sm:$0xff]  ;;  %v216_v8 = vld [vmem:[%s1028_s20 + $0x20] sm:$0xff]  ;;  %v217_v9 = vld [vmem:[%s1028_s20 + $0x28] sm:$0xff] }
  0x13   : > { %v857_v7 = vpack.c.bf16 %v215_v6, %v214_v4  ;;  %v861_v10 = vpack.c.bf16 %v217_v9, %v216_v8  ;;  %v218_v11 = vld [vmem:[%s1028_s20 + $0x30] sm:$0xff]  ;;  %v219_v12 = vld [vmem:[%s1028_s20 + $0x38] sm:$0xff]  ;;  %v220_v14 = vld [vmem:[%s1028_s20 + $0x40] sm:$0xff] }
  0x14   : > { %854 = vmatprep.subr.bf16.mxu0 %v853_v5  ;;  %885 = vmatprep.subr.bf16.mxu1 %v853_v5  ;;  %v865_v13 = vpack.c.bf16 %v219_v12, %v218_v11  ;;  %v221_v15 = vld [vmem:[%s1028_s20 + $0x48] sm:$0xff]  ;;  %v222_v17 = vld [vmem:[%s1028_s20 + $0x50] sm:$0xff]  ;;  %v223_v18 = vld [vmem:[%s1028_s20 + $0x58] sm:$0xff] }
  0x15   : > { %856 = vmatpush3.bf16.xpose.msra.mxu0 %v853_v5  ;;  %893 = vmatpush3.bf16.xpose.msra.mxu1 %v853_v5  ;;  %v869_v16 = vpack.c.bf16 %v221_v15, %v220_v14  ;;  %v873_v19 = vpack.c.bf16 %v223_v18, %v222_v17  ;;  %v224_v20 = vld [vmem:[%s1028_s20 + $0x60] sm:$0xff]  ;;  %v225_v21 = vld [vmem:[%s1028_s20 + $0x68] sm:$0xff]  ;;  %v226_v23 = vld [vmem:[%s1028_s20 + $0x70] sm:$0xff] }
  0x16   : > { %858 = vmatprep.subr.bf16.mxu0 %v857_v7  ;;  %886 = vmatprep.subr.bf16.mxu1 %v857_v7  ;;  %v877_v22 = vpack.c.bf16 %v225_v21, %v224_v20  ;;  %v227_v24 = vld [vmem:[%s1028_s20 + $0x78] sm:$0xff] }
  0x17   : > { %v881_v25 = vpack.c.bf16 %v227_v24, %v226_v23  ;;  %v211_v55 = vld [vmem:[%s1281_s1 + $0xf8] sm:$0xff] }
  0x1d   : > { %860 = vmatpush3.bf16.xpose.msra.mxu0 %v857_v7  ;;  %894 = vmatpush3.bf16.xpose.msra.mxu1 %v857_v7 }
  0x1e   : > { %862 = vmatprep.subr.bf16.mxu0 %v861_v10  ;;  %887 = vmatprep.subr.bf16.mxu1 %v861_v10 }
  0x25   : > { %864 = vmatpush3.bf16.xpose.msra.mxu0 %v861_v10  ;;  %895 = vmatpush3.bf16.xpose.msra.mxu1 %v861_v10 }
  0x26   : > { %866 = vmatprep.subr.bf16.mxu0 %v865_v13  ;;  %888 = vmatprep.subr.bf16.mxu1 %v865_v13 }
  0x2d   : > { %868 = vmatpush3.bf16.xpose.msra.mxu0 %v865_v13  ;;  %896 = vmatpush3.bf16.xpose.msra.mxu1 %v865_v13 }
  0x2e   : > { %870 = vmatprep.subr.bf16.mxu0 %v869_v16  ;;  %889 = vmatprep.subr.bf16.mxu1 %v869_v16 }
  0x35   : > { %872 = vmatpush3.bf16.xpose.msra.mxu0 %v869_v16  ;;  %897 = vmatpush3.bf16.xpose.msra.mxu1 %v869_v16 }
  0x36   : > { %874 = vmatprep.subr.bf16.mxu0 %v873_v19  ;;  %890 = vmatprep.subr.bf16.mxu1 %v873_v19 }
  0x3d   : > { %876 = vmatpush3.bf16.xpose.msra.mxu0 %v873_v19  ;;  %898 = vmatpush3.bf16.xpose.msra.mxu1 %v873_v19 }
  0x3e   : > { %878 = vmatprep.subr.bf16.mxu0 %v877_v22  ;;  %891 = vmatprep.subr.bf16.mxu1 %v877_v22 }
  0x45   : > { %880 = vmatpush3.bf16.xpose.msra.mxu0 %v877_v22  ;;  %899 = vmatpush3.bf16.xpose.msra.mxu1 %v877_v22 }
  0x46   : > { %882 = vmatprep.subr.bf16.mxu0 %v881_v25  ;;  %892 = vmatprep.subr.bf16.mxu1 %v881_v25 }
  0x4d   : > { %884 = vmatpush3.bf16.xpose.msra.mxu0 %v881_v25  ;;  %900 = vmatpush3.bf16.xpose.msra.mxu1 %v881_v25 }
  0x54   : > { %806 = vmatmul.mubr.f32.vlgmr.msra.gmra.mrb[0].mxu0 %v181_v26  ;;  %830 = vmatmul.mubr.f32.vlgmr.msra.gmra.mrb[0].mxu1 %v197_v27 }
  0x55   : > { %808 = vmatprep.mubr.f32.mxu0 %v182_v28  ;;  %832 = vmatprep.mubr.f32.mxu1 %v198_v29 }
  0x58   : > { %809 = vmatmul.mubr.f32.gmra.mrb[2].mxu0 %v183_v30  ;;  %833 = vmatmul.mubr.f32.gmra.mrb[2].mxu1 %v199_v31 }
  0x59   : > { %811 = vmatprep.mubr.f32.mxu0 %v184_v32  ;;  %835 = vmatprep.mubr.f32.mxu1 %v200_v33 }
  0x5c   : > { %812 = vmatmul.mubr.f32.gmra.mrb[4].mxu0 %v185_v34  ;;  %836 = vmatmul.mubr.f32.gmra.mrb[4].mxu1 %v201_v35 }
  0x5d   : > { %814 = vmatprep.mubr.f32.mxu0 %v186_v36  ;;  %838 = vmatprep.mubr.f32.mxu1 %v202_v37 }
  0x60   : > { %815 = vmatmul.mubr.f32.gmra.mrb[6].mxu0 %v187_v38  ;;  %839 = vmatmul.mubr.f32.gmra.mrb[6].mxu1 %v203_v39 }
  0x61   : > { %817 = vmatprep.mubr.f32.mxu0 %v188_v40  ;;  %841 = vmatprep.mubr.f32.mxu1 %v204_v41 }
  0x64   : > { %818 = vmatmul.mubr.f32.gmra.mrb[8].mxu0 %v189_v42  ;;  %842 = vmatmul.mubr.f32.gmra.mrb[8].mxu1 %v205_v43 }
  0x65   : > { %820 = vmatprep.mubr.f32.mxu0 %v190_v44  ;;  %844 = vmatprep.mubr.f32.mxu1 %v206_v45 }
  0x68   : > { %821 = vmatmul.mubr.f32.gmra.mrb[10].mxu0 %v191_v46  ;;  %845 = vmatmul.mubr.f32.gmra.mrb[10].mxu1 %v207_v47 }
  0x69   : > { %823 = vmatprep.mubr.f32.mxu0 %v192_v48  ;;  %847 = vmatprep.mubr.f32.mxu1 %v208_v49 }
  0x6c   : > { %824 = vmatmul.mubr.f32.gmra.mrb[12].mxu0 %v193_v50  ;;  %848 = vmatmul.mubr.f32.gmra.mrb[12].mxu1 %v209_v51 }
  0x6d   : > { %826 = vmatprep.mubr.f32.mxu0 %v194_v52  ;;  %850 = vmatprep.mubr.f32.mxu1 %v210_v53 }
  0x70   : > { %827 = vmatmul.mubr.f32.gmra.mrb[14].mxu0 %v195_v54  ;;  %851 = vmatmul.mubr.f32.gmra.mrb[14].mxu1 %v211_v55 }
 0x127   : > { %v807_v56 = vpop.f32.mrb[0].mxu0  ;;  %v831_v57 = vpop.f32.mrb[0].mxu1 }
 0x128   : > { %v454_v58 = vmul.f32 %v807_v56, %v807_v56  ;;  %v470_v59 = vmul.f32 %v831_v57, %v831_v57  ;;  %v294_v60 = vpop.f32.mrb[1].mxu0  ;;  %v374_v61 = vpop.f32.mrb[1].mxu1 }
 0x129   : > { %v453_v62 = vmul.f32 %v294_v60, %v294_v60  ;;  %v469_v63 = vmul.f32 %v374_v61, %v374_v61 }
 0x12a   : > { %v486_v0 = vadd.f32 %v470_v59, %v454_v58 }
 0x12b   : > { %v1136_v1 = vadd.f32 %v469_v63, %v453_v62  ;;  %v810_v2 = vpop.f32.mrb[2].mxu0  ;;  %v834_v3 = vpop.f32.mrb[2].mxu1 }
 0x12c   : > { %925 = vrsqrt.f32 %v486_v0  ;;  %v304_v4 = vpop.f32.mrb[3].mxu0  ;;  %v384_v5 = vpop.f32.mrb[3].mxu1  ;;  %v456_v6 = vmul.f32 %v810_v2, %v810_v2  ;;  %v472_v7 = vmul.f32 %v834_v3, %v834_v3  ;;  %vm510_vm0 = vcmp.eq.f32.partialorder %v486_v0, inf }
 0x12d   : > { %927 = vrsqrt.f32 %v1136_v1  ;;  %v455_v8 = vmul.f32 %v304_v4, %v304_v4  ;;  %v471_v9 = vmul.f32 %v384_v5, %v384_v5  ;;  %vm512_vm1 = vcmp.eq.f32.partialorder %v486_v0, 0.0 }
 0x12e   : > { %v1139_v12 = vadd.f32 %v472_v7, %v456_v6  ;;  %v513_v31 = vand.u32 2147483648, %v486_v0  ;;  %vm503_vm2 = vcmp.eq.f32.partialorder %v1136_v1, inf  ;;  %vm505_vm3 = vcmp.eq.f32.partialorder %v1136_v1, 0.0 }
 0x12f   : > { %v813_v10 = vpop.f32.mrb[4].mxu0  ;;  %v837_v11 = vpop.f32.mrb[4].mxu1  ;;  %v1141_v13 = vadd.f32 %v471_v9, %v455_v8  ;;  %v506_v37 = vand.u32 2147483648, %v1136_v1 }
 0x130   : > { %v458_v14 = vmul.f32 %v813_v10, %v813_v10  ;;  %v474_v15 = vmul.f32 %v837_v11, %v837_v11  ;;  %v314_v16 = vpop.f32.mrb[5].mxu0  ;;  %v394_v17 = vpop.f32.mrb[5].mxu1  ;;  %929 = vrsqrt.f32 %v1139_v12  ;;  %vm524_vm4 = vcmp.eq.f32.partialorder %v1139_v12, inf }
 0x131   : > { %v457_v18 = vmul.f32 %v314_v16, %v314_v16  ;;  %v473_v19 = vmul.f32 %v394_v17, %v394_v17  ;;  %931 = vrsqrt.f32 %v1141_v13  ;;  %vm526_vm5 = vcmp.eq.f32.partialorder %v1139_v12, 0.0 }
 0x132   : > { %v1145_v22 = vadd.f32 %v474_v15, %v458_v14  ;;  %v527_v48 = vand.u32 2147483648, %v1139_v12  ;;  %vm517_vm6 = vcmp.eq.f32.partialorder %v1141_v13, inf  ;;  %vm519_vm7 = vcmp.eq.f32.partialorder %v1141_v13, 0.0 }
 0x133   : > { %v816_v20 = vpop.f32.mrb[6].mxu0  ;;  %v840_v21 = vpop.f32.mrb[6].mxu1  ;;  %v1147_v23 = vadd.f32 %v473_v19, %v457_v18  ;;  %v520_v53 = vand.u32 2147483648, %v1141_v13 }
 0x134   : > { %v460_v24 = vmul.f32 %v816_v20, %v816_v20  ;;  %v476_v25 = vmul.f32 %v840_v21, %v840_v21  ;;  %v324_v26 = vpop.f32.mrb[7].mxu0  ;;  %v404_v27 = vpop.f32.mrb[7].mxu1  ;;  %933 = vrsqrt.f32 %v1145_v22  ;;  %vm538_vm8 = vcmp.eq.f32.partialorder %v1145_v22, inf }
 0x135   : > { %v459_v28 = vmul.f32 %v324_v26, %v324_v26  ;;  %v475_v29 = vmul.f32 %v404_v27, %v404_v27  ;;  %935 = vrsqrt.f32 %v1147_v23  ;;  %vm540_vm9 = vcmp.eq.f32.partialorder %v1145_v22, 0.0 }
 0x136   : > { %v926_v30 = vpop.eup %925  ;;  %v1162_v38 = vadd.f32 %v476_v25, %v460_v24  ;;  %vm531_vm10 = vcmp.eq.f32.partialorder %v1147_v23, inf  ;;  %vm533_vm11 = vcmp.eq.f32.partialorder %v1147_v23, 0.0  ;;  %v534_v17 = vand.u32 2147483648, %v1147_v23 }
 0x137   : > { %v928_v32 = vpop.eup %927  ;;  %v509_v33 = vmul.f32 %v926_v30, %v486_v0  ;;  %v819_v34 = vpop.f32.mrb[8].mxu0  ;;  %v1164_v39 = vadd.f32 %v475_v29, %v459_v28 }
 0x138   : > { %v843_v35 = vpop.f32.mrb[8].mxu1  ;;  %v502_v36 = vmul.f32 %v928_v32, %v1136_v1  ;;  %v334_v40 = vpop.f32.mrb[9].mxu0  ;;  %v462_v43 = vmul.f32 %v819_v34, %v819_v34  ;;  %937 = vrsqrt.f32 %v1162_v38  ;;  %vm552_vm12 = vcmp.eq.f32.partialorder %v1162_v38, inf }
 0x139   : > { %v414_v41 = vpop.f32.mrb[9].mxu1  ;;  %v511_v42 = vsel %vm510_vm0, %v486_v0, %v509_v33  ;;  %v478_v44 = vmul.f32 %v843_v35, %v843_v35  ;;  %939 = vrsqrt.f32 %v1164_v39  ;;  %v461_v49 = vmul.f32 %v334_v40, %v334_v40 }
 0x13a   : > { %v514_v45 = vsel %vm512_vm1, %v513_v31, %v511_v42  ;;  %v504_v46 = vsel %vm503_vm2, %v1136_v1, %v502_v36  ;;  %v930_v52 = vpop.eup %929  ;;  %v477_v59 = vmul.f32 %v414_v41, %v414_v41  ;;  %v541_v0 = vand.u32 2147483648, %v1145_v22 }
 0x13b   : > { %614 = vst [vmem:[%s1158_s13 + $0x8] sm:$0xff] %v514_v45  ;;  %v507_v47 = vsel %vm505_vm3, %v506_v37, %v504_v46  ;;  %v822_v50 = vpop.f32.mrb[10].mxu0  ;;  %v846_v51 = vpop.f32.mrb[10].mxu1  ;;  %v1183_v54 = vadd.f32 %v478_v44, %v462_v43  ;;  %v523_v58 = vmul.f32 %v930_v52, %v1139_v12  ;;  %vm554_vm13 = vcmp.eq.f32.partialorder %v1162_v38, 0.0 }
 0x13c   : > { %613 = vst [vmem:[%s1158_s13] sm:$0xff] %v507_v47  ;;  %v344_v55 = vpop.f32.mrb[11].mxu0  ;;  %v424_v56 = vpop.f32.mrb[11].mxu1  ;;  %v464_v60 = vmul.f32 %v822_v50, %v822_v50  ;;  %v480_v61 = vmul.f32 %v846_v51, %v846_v51  ;;  %v1194_v1 = vadd.f32 %v477_v59, %v461_v49  ;;  %v555_v18 = vand.u32 2147483648, %v1162_v38 }
 0x13d   : > { %v932_v57 = vpop.eup %931  ;;  %941 = vrsqrt.f32 %v1183_v54  ;;  %v525_v63 = vsel %vm524_vm4, %v1139_v12, %v523_v58  ;;  %v463_v8 = vmul.f32 %v344_v55, %v344_v55  ;;  %v479_v9 = vmul.f32 %v424_v56, %v424_v56 }
 0x13e   : > { %v516_v62 = vmul.f32 %v932_v57, %v1141_v13  ;;  %v1196_v2 = vadd.f32 %v480_v61, %v464_v60  ;;  %v934_v5 = vpop.eup %933  ;;  %v528_v6 = vsel %vm526_vm5, %v527_v48, %v525_v63  ;;  %943 = vrsqrt.f32 %v1194_v1 }
 0x13f   : > { %v825_v3 = vpop.f32.mrb[12].mxu0  ;;  %v849_v4 = vpop.f32.mrb[12].mxu1  ;;  %616 = vst [vmem:[%s1158_s13 + $0x18] sm:$0xff] %v528_v6  ;;  %v537_v16 = vmul.f32 %v934_v5, %v1145_v22  ;;  %v1223_v26 = vadd.f32 %v479_v9, %v463_v8  ;;  %vm545_vm14 = vcmp.eq.f32.partialorder %v1164_v39, inf  ;;  %vm547_vm15 = vcmp.eq.f32.partialorder %v1164_v39, 0.0 }
 0x140   : > { %v518_v7 = vsel %vm517_vm6, %v1141_v13, %v516_v62  ;;  %v354_v10 = vpop.f32.mrb[13].mxu0  ;;  %v434_v11 = vpop.f32.mrb[13].mxu1  ;;  %945 = vrsqrt.f32 %v1196_v2  ;;  %v466_v27 = vmul.f32 %v825_v3, %v825_v3  ;;  %v482_v33 = vmul.f32 %v849_v4, %v849_v4 }
 0x141   : > { %v936_v14 = vpop.eup %935  ;;  %v521_v15 = vsel %vm519_vm7, %v520_v53, %v518_v7  ;;  %v539_v13 = vsel %vm538_vm8, %v1145_v22, %v537_v16  ;;  %947 = vrsqrt.f32 %v1223_v26  ;;  %v465_v34 = vmul.f32 %v354_v10, %v354_v10 }
 0x142   : > { %615 = vst [vmem:[%s1158_s13 + $0x10] sm:$0xff] %v521_v15  ;;  %v530_v12 = vmul.f32 %v936_v14, %v1147_v23  ;;  %v938_v21 = vpop.eup %937  ;;  %v542_v24 = vsel %vm540_vm9, %v541_v0, %v539_v13  ;;  %v548_v35 = vand.u32 2147483648, %v1164_v39  ;;  %v498_v36 = vadd.f32 %v482_v33, %v466_v27 }
 0x143   : > { %v828_v19 = vpop.f32.mrb[14].mxu0  ;;  %v852_v20 = vpop.f32.mrb[14].mxu1  ;;  %618 = vst [vmem:[%s1158_s13 + $0x28] sm:$0xff] %v542_v24  ;;  %v551_v32 = vmul.f32 %v938_v21, %v1162_v38  ;;  %v481_v37 = vmul.f32 %v434_v11, %v434_v11  ;;  %vm566_vm0 = vcmp.eq.f32.partialorder %v1183_v54, inf  ;;  %v569_v47 = vand.u32 2147483648, %v1183_v54 }
 0x144   : > { %v532_v25 = vsel %vm531_vm10, %v1147_v23, %v530_v12  ;;  %v364_v28 = vpop.f32.mrb[15].mxu0  ;;  %v444_v29 = vpop.f32.mrb[15].mxu1  ;;  %v468_v43 = vmul.f32 %v828_v19, %v828_v19  ;;  %v484_v44 = vmul.f32 %v852_v20, %v852_v20  ;;  %949 = vrsqrt.f32 %v498_v36 }
 0x145   : > { %v940_v30 = vpop.eup %939  ;;  %v535_v31 = vsel %vm533_vm11, %v534_v17, %v532_v25  ;;  %v553_v23 = vsel %vm552_vm12, %v1162_v38, %v551_v32  ;;  %v497_v48 = vadd.f32 %v481_v37, %v465_v34  ;;  %vm568_vm1 = vcmp.eq.f32.partialorder %v1183_v54, 0.0 }
 0x146   : > { %617 = vst [vmem:[%s1158_s13 + $0x20] sm:$0xff] %v535_v31  ;;  %v544_v22 = vmul.f32 %v940_v30, %v1164_v39  ;;  %v556_v41 = vsel %vm554_vm13, %v555_v18, %v553_v23  ;;  %v500_v49 = vadd.f32 %v484_v44, %v468_v43  ;;  %v483_v51 = vmul.f32 %v444_v29, %v444_v29 }
 0x147   : > { %v942_v40 = vpop.eup %941  ;;  %620 = vst [vmem:[%s1158_s13 + $0x38] sm:$0xff] %v556_v41  ;;  %951 = vrsqrt.f32 %v497_v48  ;;  %vm559_vm2 = vcmp.eq.f32.partialorder %v1194_v1, inf  ;;  %v562_v56 = vand.u32 2147483648, %v1194_v1  ;;  %vm561_vm3 = vcmp.eq.f32.partialorder %v1194_v1, 0.0 }
 0x148   : > { %v546_v42 = vsel %vm545_vm14, %v1164_v39, %v544_v22  ;;  %v565_v46 = vmul.f32 %v942_v40, %v1183_v54  ;;  %v944_v50 = vpop.eup %943  ;;  %v467_v39 = vmul.f32 %v364_v28, %v364_v28  ;;  %953 = vrsqrt.f32 %v500_v49 }
 0x149   : > { %v549_v45 = vsel %vm547_vm15, %v548_v35, %v546_v42  ;;  %v558_v55 = vmul.f32 %v944_v50, %v1194_v1  ;;  %vm580_vm4 = vcmp.eq.f32.partialorder %v1196_v2, inf  ;;  %vm582_vm5 = vcmp.eq.f32.partialorder %v1196_v2, 0.0 }
 0x14a   : > { %619 = vst [vmem:[%s1158_s13 + $0x30] sm:$0xff] %v549_v45  ;;  %v567_v38 = vsel %vm566_vm0, %v1183_v54, %v565_v46  ;;  %v946_v52 = vpop.eup %945  ;;  %v583_v54 = vand.u32 2147483648, %v1196_v2  ;;  %v499_v61 = vadd.f32 %v483_v51, %v467_v39  ;;  %vm573_vm6 = vcmp.eq.f32.partialorder %v1223_v26, inf }
 0x14b   : > { %v570_v53 = vsel %vm568_vm1, %v569_v47, %v567_v38  ;;  %v579_v57 = vmul.f32 %v946_v52, %v1196_v2  ;;  %v560_v58 = vsel %vm559_vm2, %v1194_v1, %v558_v55  ;;  %v948_v62 = vpop.eup %947  ;;  %v576_v1 = vand.u32 2147483648, %v1223_v26 }
 0x14c   : > { %622 = vst [vmem:[%s1158_s13 + $0x48] sm:$0xff] %v570_v53  ;;  %v563_v59 = vsel %vm561_vm3, %v562_v56, %v560_v58  ;;  %v572_v0 = vmul.f32 %v948_v62, %v1223_v26  ;;  %955 = vrsqrt.f32 %v499_v61  ;;  %vm575_vm7 = vcmp.eq.f32.partialorder %v1223_v26, 0.0 }
 0x14d   : > { %v581_v60 = vsel %vm580_vm4, %v1196_v2, %v579_v57  ;;  %621 = vst [vmem:[%s1158_s13 + $0x40] sm:$0xff] %v563_v59  ;;  %vm594_vm8 = vcmp.eq.f32.partialorder %v498_v36, inf  ;;  %v597_v6 = vand.u32 2147483648, %v498_v36  ;;  %vm596_vm9 = vcmp.eq.f32.partialorder %v498_v36, 0.0 }
 0x14e   : > { %v584_v63 = vsel %vm582_vm5, %v583_v54, %v581_v60  ;;  %v950_v3 = vpop.eup %949  ;;  %v574_v4 = vsel %vm573_vm6, %v1223_v26, %v572_v0  ;;  %vm587_vm10 = vcmp.eq.f32.partialorder %v497_v48, inf  ;;  %v590_v14 = vand.u32 2147483648, %v497_v48 }
 0x14f   : > { %624 = vst [vmem:[%s1158_s13 + $0x58] sm:$0xff] %v584_v63  ;;  %v577_v5 = vsel %vm575_vm7, %v576_v1, %v574_v4  ;;  %v593_v2 = vmul.f32 %v950_v3, %v498_v36  ;;  %vm589_vm11 = vcmp.eq.f32.partialorder %v497_v48, 0.0  ;;  %vm608_vm12 = vcmp.eq.f32.partialorder %v500_v49, inf }
 0x150   : > { %623 = vst [vmem:[%s1158_s13 + $0x50] sm:$0xff] %v577_v5  ;;  %v611_v12 = vand.u32 2147483648, %v500_v49  ;;  %vm610_vm13 = vcmp.eq.f32.partialorder %v500_v49, 0.0  ;;  %vm601_vm14 = vcmp.eq.f32.partialorder %v499_v61, inf  ;;  %v604_v21 = vand.u32 2147483648, %v499_v61 }
 0x151   : > { %v952_v7 = vpop.eup %951  ;;  %v595_v8 = vsel %vm594_vm8, %v498_v36, %v593_v2  ;;  %vm603_vm15 = vcmp.eq.f32.partialorder %v499_v61, 0.0 }
 0x152   : > { %v954_v9 = vpop.eup %953  ;;  %v598_v10 = vsel %vm596_vm9, %v597_v6, %v595_v8  ;;  %v586_v11 = vmul.f32 %v952_v7, %v497_v48 }
 0x153   : > { %626 = vst [vmem:[%s1158_s13 + $0x68] sm:$0xff] %v598_v10  ;;  %v607_v15 = vmul.f32 %v954_v9, %v500_v49 }
 0x154   : > { %v588_v16 = vsel %vm587_vm10, %v497_v48, %v586_v11 }
 0x155   : > { %v591_v17 = vsel %vm589_vm11, %v590_v14, %v588_v16  ;;  %v609_v13 = vsel %vm608_vm12, %v500_v49, %v607_v15 }
 0x156   : > { %v956_v18 = vpop.eup %955  ;;  %625 = vst [vmem:[%s1158_s13 + $0x60] sm:$0xff] %v591_v17  ;;  %v612_v19 = vsel %vm610_vm13, %v611_v12, %v609_v13 }
 0x157   : > { %628 = vst [vmem:[%s1158_s13 + $0x78] sm:$0xff] %v612_v19  ;;  %v600_v20 = vmul.f32 %v956_v18, %v499_v61 }
 0x159   : > { %v602_v24 = vsel %vm601_vm14, %v499_v61, %v600_v20 }
 0x15a   : > { %v605_v25 = vsel %vm603_vm15, %v604_v21, %v602_v24 }
 0x15b   : > { %627 = vst [vmem:[%s1158_s13 + $0x70] sm:$0xff] %v605_v25 }
 0x15c PF: > { %s12_s11 = sadd.s32 1, %s979_s11   ;;  %s1283_s9 = smov %s975_s10 }
 0x15d   : > { %p9_p5 = scmp.ge.s32.totalorder %s12_s11, 4   ;;  %s1284_s10 = smov %s1286_s12 }
 0x15f   :  { %11 = sbr.rel (!%p9_p5) target bundleno = 2 (0x2), region = 58 }

</bundles_post_ra>
